<compile_context>
chip_gen: v7x
topology: tpu7x:2x2x1
jax: 0.10.0
libtpu: 0.0.40
codegen_flags: <defaults>
</compile_context>

<pallas_src>
import functools

import jax
import jax.numpy as jnp
from jax import lax
from jax.experimental import pallas as pl
from jax.experimental.pallas import tpu as pltpu

# Plain Python scalars only (module-level jnp arrays would become captured
# jaxpr consts, which pallas_call rejects).
NEG_BIG = -1e30
EPS = 1e-30

PAD_ID, UNK_ID, BOS_ID, EOS_ID = 0, 1, 2, 3

LAMBDA_CLS = 1.0
LAMBDA_PTR = 1.0
LAMBDA_EMPTY_PTR = 1.0
LAMBDA_ROW_CONTR = 0.5
LAMBDA_COL_CONTR = 0.5
TEMPERATURE = 0.1

_VMEM = pltpu.MemorySpace.VMEM


# --------------------------------------------------------------------------
# 1) Classification loss: masked cross-entropy over (B*L, V), row-tiled grid,
#    per-block partial sums (parallel grid, no carried accumulator).
# --------------------------------------------------------------------------
def _cls_kernel(logits_ref, tgt_ref, out_ref, *, m_rows):
    pid = pl.program_id(0)
    tm = logits_ref.shape[0]

    x = logits_ref[...]                                    # (TM, V) native dtype
    tgt = tgt_ref[...]                                     # (TM, 1) int32

    # Ragged last block: rows >= m_rows hold garbage (no HBM pad copy was
    # made) -> zero them before the exp so no NaN/Inf can leak into the sums.
    row = pid * tm + lax.broadcasted_iota(jnp.int32, (tm, 1), 0)
    in_rows = row < m_rows                                 # (TM, 1) bool
    x = jnp.where(in_rows, x, 0.0)

    # max / gather / subtract on the native dtype (exact); f32 only for the
    # exp/LSE accumulation.  bf16 logits keep the exp on the bf16 EUP path.
    row_max = jnp.max(x, axis=1, keepdims=True)
    shifted = x - row_max
    if x.dtype == jnp.bfloat16:
        sumexp = jnp.sum(jnp.exp(shifted).astype(jnp.float32),
                         axis=1, keepdims=True)
    else:
        sumexp = jnp.sum(jnp.exp(shifted.astype(jnp.float32)),
                         axis=1, keepdims=True)
    lse = jnp.log(sumexp) + row_max.astype(jnp.float32)

    col = lax.broadcasted_iota(jnp.int32, x.shape, 1)
    # one non-zero per row -> summing in the native dtype is exact
    tgt_logit = jnp.sum(jnp.where(col == tgt, x, 0.0),
                        axis=1, keepdims=True).astype(jnp.float32)
    ce = lse - tgt_logit                                   # (TM, 1) f32

    valid = (in_rows & (tgt != PAD_ID) & (tgt != UNK_ID) &
             (tgt != BOS_ID) & (tgt != EOS_ID)).astype(jnp.float32)

    ce_sum = jnp.sum(ce * valid)
    valid_sum = jnp.sum(valid)

    # Per-block partials in a lane-dense vector: lane 0 = sum(ce*valid),
    # lane 1 = sum(valid).  No cross-iteration carry -> "parallel" grid.
    lane = lax.broadcasted_iota(jnp.int32, (1, 1, 128), 2)
    out_ref[...] = jnp.where(lane == 0, ce_sum,
                             jnp.where(lane == 1, valid_sum, 0.0))


def _cls_tiling(m_rows, vocab, itemsize, tile_m):
    try:
        vmem_cap = int(getattr(pltpu.get_tpu_info(), "vmem_capacity_bytes"))
    except Exception:
        vmem_cap = 64 << 20           # conservative: assume v7x-class VMEM
    big_vmem = vmem_cap >= (100 << 20)  # v5e/v6e: 128 MiB, v7x: 64 MiB
    if tile_m is None:
        target_bytes = (16 << 20) if big_vmem else (8 << 20)
        tile_cap = 4096 if big_vmem else 1024
        tile_m = max(8, min(m_rows, target_bytes // max(1, vocab * itemsize)))
        tile_m = min(tile_m, tile_cap)
    tile_m = max(8, (int(tile_m) // 8) * 8)
    # double-buffered logits + tgt blocks + headroom; cap below physical VMEM
    need = 2 * tile_m * (vocab * itemsize + 4) + (8 << 20)
    cap = (96 << 20) if big_vmem else (48 << 20)
    vmem_limit = int(min(max(need, 32 << 20), cap))
    # TODO(synk): on v7x add pipeline_mode=pl.Buffered(3) to the logits spec
    # if a trace shows exposed DMA at these block sizes.
    return tile_m, vmem_limit


def cls_loss_pallas(tag_logits, tokens, tile_m=None):
    B, L, V = tag_logits.shape
    M = B * L
    logits2d = tag_logits.reshape(M, V)                    # native dtype, no pad
    tgt2d = tokens.reshape(M, 1).astype(jnp.int32)         # no pad either

    itemsize = jnp.dtype(tag_logits.dtype).itemsize
    tile_m, vmem_limit = _cls_tiling(M, V, itemsize, tile_m)
    grid_m = pl.cdiv(M, tile_m)

    cost = pl.CostEstimate(flops=int(6 * M * V),
                           transcendentals=int(M * V),
                           bytes_accessed=int(M * V * itemsize + M * 4 +
                                              grid_m * 128 * 4))

    kernel = functools.partial(_cls_kernel, m_rows=M)
    partial_sums = pl.pallas_call(
        kernel,
        out_shape=jax.ShapeDtypeStruct((grid_m, 1, 128), jnp.float32),
        grid=(grid_m,),
        in_specs=[pl.BlockSpec((tile_m, V), lambda i: (i, 0)),
                  pl.BlockSpec((tile_m, 1), lambda i: (i, 0))],
        out_specs=pl.BlockSpec((1, 1, 128), lambda i: (i, 0, 0)),
        compiler_params=pltpu.CompilerParams(
            dimension_semantics=("parallel",),
            vmem_limit_bytes=vmem_limit),
        cost_estimate=cost,
    )(logits2d, tgt2d)

    ce_total = jnp.sum(partial_sums[:, 0, 0])
    valid_total = jnp.sum(partial_sums[:, 0, 1])
    return ce_total / jnp.maximum(valid_total, 1.0)


# --------------------------------------------------------------------------
# 2) Fused small losses: layout-pointer loss + empty-pointer BCE +
#    row/col span-aware contrastive.  Everything is a few KB -> one
#    VMEM-resident call, lane-dense (1,128) scalar output.
# --------------------------------------------------------------------------
def _contrastive_sum(sim_raw, coef_raw, inv_temp):
    sim = sim_raw.astype(jnp.float32) * inv_temp           # (B, Nb, Nb)
    coef = coef_raw.astype(jnp.float32)
    n = sim.shape[-1]
    r2 = lax.broadcasted_iota(jnp.int32, (1, n, n), 1)
    c2 = lax.broadcasted_iota(jnp.int32, (1, n, n), 2)
    offdiag = r2 != c2
    pos = (coef > 0.0) & offdiag
    neg = jnp.logical_not(pos) & offdiag

    cp_sum = jnp.sum(jnp.where(pos, coef, 0.0), axis=-1)   # (B, Nb)
    pos_cnt = jnp.sum(pos.astype(jnp.float32), axis=-1)
    neg_cnt = jnp.sum(neg.astype(jnp.float32), axis=-1)

    max_val = jnp.max(jnp.where(offdiag, sim, NEG_BIG), axis=-1, keepdims=True)
    e = jnp.exp(sim - max_val)
    pos_sum = jnp.sum(jnp.where(pos, e, 0.0), axis=-1)
    neg_sum = jnp.sum(jnp.where(neg, e, 0.0), axis=-1)

    valid = (cp_sum != 0.0) & (pos_cnt > 0.0) & (neg_cnt > 0.0)
    pos_term = jnp.log(jnp.maximum(pos_sum, EPS)) + jnp.log(jnp.maximum(cp_sum, EPS))
    neg_term = jnp.log(jnp.maximum(neg_sum, EPS))
    safe_cp = jnp.where(valid, cp_sum, 1.0)
    loss_j = jnp.clip(-(pos_term - neg_term) / safe_cp, -100.0, 100.0)
    return jnp.sum(jnp.where(valid, loss_j, 0.0))


def _small_losses_kernel(ptr_ref, dmask_ref, box_ref, empty_ref, emask_ref,
                         rsim_ref, rcoef_ref, csim_ref, ccoef_ref, out_ref,
                         *, inv_temp):
    # ---- layout pointer loss: masked log-softmax over T, gather at box ----
    ptr = ptr_ref[...].astype(jnp.float32)                 # (B, N, T)
    dmask = dmask_ref[...]                                 # (B, 1, T) int32
    box = box_ref[...]                                     # (B, N, 1) int32
    # TODO(synk): reference yields -inf/NaN when a valid box points at a
    # fully-masked row; a finite -1e30 surrogate is used instead.
    masked = jnp.where(dmask > 0, ptr, NEG_BIG)
    mmax = jnp.max(masked, axis=-1, keepdims=True)
    lse = jnp.log(jnp.sum(jnp.exp(masked - mmax), axis=-1, keepdims=True)) + mmax
    col = lax.broadcasted_iota(jnp.int32, masked.shape, 2)
    tgt_logp = jnp.sum(jnp.where(col == box, masked - lse, 0.0),
                       axis=-1, keepdims=True)             # (B, N, 1)
    box_valid = (box != -1).astype(jnp.float32)            # (B, N, 1)
    ptr_sum = jnp.sum(-tgt_logp * box_valid)                # / (B*N) in wrapper

    # ---- empty-pointer masked BCE-with-logits ----
    x = empty_ref[...].astype(jnp.float32)                 # (B, T)
    y = emask_ref[...].astype(jnp.float32)                 # (B, T)
    bce = jnp.maximum(x, 0.0) - x * y + jnp.log1p(jnp.exp(-jnp.abs(x)))
    empty_loss = jnp.sum(bce * y) / jnp.maximum(jnp.sum(y), 1.0)

    # ---- span-aware contrastive (rows / cols) ----
    row_sum = _contrastive_sum(rsim_ref[...], rcoef_ref[...], inv_temp)
    col_sum = _contrastive_sum(csim_ref[...], ccoef_ref[...], inv_temp)

    lane = lax.broadcasted_iota(jnp.int32, (1, 128), 1)
    out_ref[...] = jnp.where(lane == 0, ptr_sum,
                   jnp.where(lane == 1, empty_loss,
                   jnp.where(lane == 2, row_sum,
                   jnp.where(lane == 3, col_sum, 0.0))))


def small_losses_pallas(pointer_logits, box_indices, data_tag_mask,
                        empty_logits, empty_mask,
                        row_sim, row_coef, col_sim, col_coef, temperature):
    B, N, T = pointer_logits.shape
    Nb = row_sim.shape[1]
    # Masks/indices are tiny; int32 keeps Mosaic lowering simple (no bool
    # refs).  sim/coef matrices are passed separately in their native dtype
    # (no concatenate copies); casts happen in-register inside the kernel.
    dmask = data_tag_mask.reshape(B, 1, T).astype(jnp.int32)
    box = box_indices.reshape(B, N, 1).astype(jnp.int32)
    emask = empty_mask.astype(jnp.int32)

    args = (pointer_logits, dmask, box, empty_logits, emask,
            row_sim, row_coef, col_sim, col_coef)
    tot_bytes = sum(int(a.size) * jnp.dtype(a.dtype).itemsize for a in args)
    vmem_limit = int(min(max(4 * tot_bytes + (4 << 20), 16 << 20), 48 << 20))

    kernel = functools.partial(_small_losses_kernel,
                               inv_temp=float(1.0 / temperature))
    res = pl.pallas_call(
        kernel,
        out_shape=jax.ShapeDtypeStruct((1, 128), jnp.float32),
        in_specs=[pl.BlockSpec(memory_space=_VMEM)] * len(args),
        out_specs=pl.BlockSpec(memory_space=_VMEM),
        compiler_params=pltpu.CompilerParams(vmem_limit_bytes=vmem_limit),
    )(*args)

    ptr_loss = res[0, 0] / float(B * N)                    # == loss.mean()
    empty_loss = res[0, 1]
    row_loss = res[0, 2] / float(B * Nb)
    col_loss = res[0, 3] / float(B * Nb)
    return ptr_loss, empty_loss, row_loss, col_loss


# --------------------------------------------------------------------------
# Full TFLOP loss (glue in plain JAX)
# --------------------------------------------------------------------------
def tflop_loss(batch, outputs, *, cls_tile_m=None):
    cls_l = cls_loss_pallas(outputs['tag_logits'], batch['tokens'],
                            tile_m=cls_tile_m)
    ptr_l, empty_l, row_l, col_l = small_losses_pallas(
        outputs['pointer_logits'], batch['box_indices'], outputs['data_tag_mask'],
        outputs['empty_logits'], batch['empty_mask'],
        outputs['row_sim_matrix'], outputs['row_span_coef'],
        outputs['col_sim_matrix'], outputs['col_span_coef'],
        TEMPERATURE)
    total = (LAMBDA_CLS * cls_l + LAMBDA_PTR * ptr_l + LAMBDA_EMPTY_PTR * empty_l +
             LAMBDA_ROW_CONTR * row_l + LAMBDA_COL_CONTR * col_l)
    return {'loss': total, 'cls_loss': cls_l, 'ptr_loss': ptr_l,
            'empty_ptr_loss': empty_l, 'row_contr_loss': row_l,
            'col_contr_loss': col_l}


# --------------------------------------------------------------------------
# Pure-JAX reference (mirrors the torch module) for a correctness self-check
# --------------------------------------------------------------------------
def _reference_loss(batch, outputs, temperature=TEMPERATURE):
    tokens = batch['tokens']
    box_indices = batch['box_indices']
    empty_mask = batch['empty_mask']
    tag_logits = outputs['tag_logits'].astype(jnp.float32)
    pointer_logits = outputs['pointer_logits'].astype(jnp.float32)
    empty_logits = outputs['empty_logits'].astype(jnp.float32)
    data_tag_mask = outputs['data_tag_mask']

    B, L, V = tag_logits.shape
    logits2d = tag_logits.reshape(B * L, V)
    tgt = tokens.reshape(B * L)
    valid = ~jnp.isin(tgt, jnp.array([PAD_ID, UNK_ID, BOS_ID, EOS_ID]))
    lse = jax.scipy.special.logsumexp(logits2d, axis=-1)
    picked = jnp.take_along_axis(logits2d, tgt[:, None], axis=-1)[:, 0]
    cls = jnp.sum((lse - picked) * valid) / jnp.maximum(jnp.sum(valid), 1)

    Bp, N, T = pointer_logits.shape
    masked = jnp.where(data_tag_mask[:, None, :], pointer_logits, -jnp.inf)
    logp = jax.nn.log_softmax(masked, axis=-1)
    idx = jnp.clip(box_indices, 0, T - 1)[..., None]
    gathered = jnp.take_along_axis(logp, idx, axis=-1)[..., 0]
    valid_box = (box_indices != -1) & (box_indices < T)
    ptr = jnp.sum(jnp.where(valid_box, -gathered, 0.0)) / (Bp * N)

    y = empty_mask.astype(jnp.float32)
    x = empty_logits
    bce = jnp.maximum(x, 0.0) - x * y + jnp.log1p(jnp.exp(-jnp.abs(x)))
    empty = jnp.sum(bce * y) / jnp.maximum(jnp.sum(y), 1.0)

    def contr(sim_matrix, span_coef):
        Bc, Nc = sim_matrix.shape[0], sim_matrix.shape[1]
        eye = jnp.eye(Nc, dtype=bool)
        total = jnp.float32(0.0)
        for b in range(Bc):
            coef = span_coef[b].astype(jnp.float32)
            sim = sim_matrix[b].astype(jnp.float32) / temperature
            pos_mask = (coef > 0) & ~eye
            neg_mask = ~pos_mask & ~eye
            for j in range(Nc):
                cp_sum = jnp.sum(jnp.where(pos_mask[j], coef[j], 0.0))
                pos_cnt = jnp.sum(pos_mask[j])
                neg_cnt = jnp.sum(neg_mask[j])
                offd = pos_mask[j] | neg_mask[j]
                max_val = jnp.max(jnp.where(offd, sim[j], -jnp.inf))
                pos_sum = jnp.sum(jnp.where(pos_mask[j], jnp.exp(sim[j] - max_val), 0.0))
                neg_sum = jnp.sum(jnp.where(neg_mask[j], jnp.exp(sim[j] - max_val), 0.0))
                pos_term = jnp.log(pos_sum) + jnp.log(cp_sum)
                neg_term = jnp.log(neg_sum)
                loss_j = jnp.clip(-(pos_term - neg_term) /
                                  jnp.where(cp_sum == 0, 1.0, cp_sum),
                                  -100.0, 100.0)
                ok = (cp_sum != 0) & (pos_cnt > 0) & (neg_cnt > 0)
                total = total + jnp.where(ok, loss_j, 0.0)
        return total / (Bc * Nc)

    row = contr(outputs['row_sim_matrix'], outputs['row_span_coef'])
    col = contr(outputs['col_sim_matrix'], outputs['col_span_coef'])
    total = (LAMBDA_CLS * cls + LAMBDA_PTR * ptr + LAMBDA_EMPTY_PTR * empty +
             LAMBDA_ROW_CONTR * row + LAMBDA_COL_CONTR * col)
    return {'loss': total, 'cls_loss': cls, 'ptr_loss': ptr,
            'empty_ptr_loss': empty, 'row_contr_loss': row,
            'col_contr_loss': col}


if __name__ == "__main__":
    key = jax.random.PRNGKey(0)
    B, L, V = 2, 7, 32       # L=7 -> M=14: exercises the ragged last CE block
    N, T = 6, 8              # number of boxes, layout-token sequence length
    Nb = 6                   # boxes for contrastive sim matrices
    ks = jax.random.split(key, 12)

    # batch
    tokens = jax.random.randint(ks[0], (B, L), 0, V)
    box_indices = jax.random.randint(ks[1], (B, N), 2, 7)     # point into masked range
    box_indices = box_indices.at[:, -1].set(-1)               # some invalid boxes
    empty_mask = jax.random.bernoulli(ks[2], 0.5, (B, T))
    empty_mask = empty_mask.at[:, 0].set(True)                # ensure >=1 valid

    # model outputs
    tag_logits = jax.random.normal(ks[3], (B, L, V), jnp.float32)
    pointer_logits = jax.random.normal(ks[4], (B, N, T), jnp.float32)
    empty_logits = jax.random.normal(ks[5], (B, T), jnp.float32)
    data_tag_mask = jnp.zeros((B, T), jnp.bool_).at[:, 2:7].set(True)

    def sym(k):
        m = jax.random.uniform(k, (B, Nb, Nb), minval=-1.0, maxval=1.0)
        return (m + jnp.swapaxes(m, 1, 2)) * 0.5

    row_sim = sym(ks[6])
    col_sim = sym(ks[7])
    row_coef = (jax.random.uniform(ks[8], (B, Nb, Nb)) *
                jax.random.bernoulli(ks[9], 0.5, (B, Nb, Nb)).astype(jnp.float32))
    col_coef = (jax.random.uniform(ks[10], (B, Nb, Nb)) *
                jax.random.bernoulli(ks[11], 0.5, (B, Nb, Nb)).astype(jnp.float32))

    batch = {'tokens': tokens, 'box_indices': box_indices, 'empty_mask': empty_mask}
    outputs = {'tag_logits': tag_logits, 'pointer_logits': pointer_logits,
               'empty_logits': empty_logits, 'data_tag_mask': data_tag_mask,
               'row_sim_matrix': row_sim, 'col_sim_matrix': col_sim,
               'row_span_coef': row_coef, 'col_span_coef': col_coef}

    # tile_m=8 -> grid=(2,): exercises multi-block parallel grid + ragged block
    loss_dict = tflop_loss(batch, outputs, cls_tile_m=8)
    jax.block_until_ready(loss_dict['loss'])

    ref = _reference_loss(batch, outputs)
    for k_ in ('cls_loss', 'ptr_loss', 'empty_ptr_loss',
               'row_contr_loss', 'col_contr_loss', 'loss'):
        a = float(loss_dict[k_]); b = float(ref[k_])
        assert jnp.isfinite(loss_dict[k_]), f"non-finite {k_}"
        assert abs(a - b) <= 1e-3 + 1e-3 * abs(b), f"{k_}: pallas={a} ref={b}"
    print("KERNEL_OK")
</pallas_src>

<mosaic_0001>
module attributes {stable_mosaic.version = 11 : i64} {
  func.func @_cls_kernel(%arg0: i32, %arg1: memref<8x32xf32, #tpu.memory_space<vmem>>, %arg2: memref<8x1xi32, #tpu.memory_space<vmem>>, %arg3: memref<1x1x128xf32, #tpu.memory_space<vmem>>) attributes {dimension_semantics = [#tpu.dimension_semantics<parallel>], iteration_bounds = array<i64: 2>, scalar_prefetch = 0 : i64, scratch_operands = 0 : i64, tpu.core_type = #tpu.core_type<tc>, window_params = [{transform_indices = @transform_0, window_bounds = array<i64: 8, 32>}, {transform_indices = @transform_1, window_bounds = array<i64: 8, 1>}, {transform_indices = @transform_2, window_bounds = array<i64: 1, 1, 128>}]} {
    %c0 = arith.constant 0 : index
    %c0_0 = arith.constant 0 : index
    %0 = vector.load %arg1[%c0, %c0_0] : memref<8x32xf32, #tpu.memory_space<vmem>>, vector<8x32xf32>
    %c0_1 = arith.constant 0 : index
    %c0_2 = arith.constant 0 : index
    %1 = vector.load %arg2[%c0_1, %c0_2] : memref<8x1xi32, #tpu.memory_space<vmem>>, vector<8x1xi32>
    %c8_i32 = arith.constant 8 : i32
    %2 = arith.muli %arg0, %c8_i32 : i32
    %3 = tpu.iota {dimensions = array<i32: 0>} : vector<8x1xi32>
    %4 = vector.broadcast %2 : i32 to vector<8x1xi32>
    %5 = arith.addi %4, %3 : vector<8x1xi32>
    %c14_i32 = arith.constant 14 : i32
    %6 = vector.broadcast %c14_i32 : i32 to vector<8x1xi32>
    %7 = arith.cmpi slt, %5, %6 : vector<8x1xi32>
    %cst = arith.constant 0.000000e+00 : f32
    %8 = vector.shape_cast %7 : vector<8x1xi1> to vector<8x1xi1>
    %9 = vector.broadcast %8 : vector<8x1xi1> to vector<8x32xi1>
    %10 = vector.broadcast %cst : f32 to vector<8x32xf32>
    %11 = arith.select %9, %0, %10 : vector<8x32xi1>, vector<8x32xf32>
    %cst_3 = arith.constant dense<0xFF800000> : vector<8xf32>
    %12 = vector.multi_reduction <maximumf>, %11, %cst_3 [1] : vector<8x32xf32> to vector<8xf32>
    %13 = vector.shape_cast %12 : vector<8xf32> to vector<8x1xf32>
    %14 = vector.broadcast %13 : vector<8x1xf32> to vector<8x32xf32>
    %15 = arith.subf %11, %14 : vector<8x32xf32>
    %16 = math.exp %15 : vector<8x32xf32>
    %cst_4 = arith.constant dense<0.000000e+00> : vector<8xf32>
    %17 = vector.multi_reduction <add>, %16, %cst_4 [1] : vector<8x32xf32> to vector<8xf32>
    %18 = vector.shape_cast %17 : vector<8xf32> to vector<8x1xf32>
    %19 = math.log %18 : vector<8x1xf32>
    %20 = arith.addf %19, %13 : vector<8x1xf32>
    %21 = tpu.iota {dimensions = array<i32: 1>} : vector<8x32xi32>
    %22 = vector.broadcast %1 : vector<8x1xi32> to vector<8x32xi32>
    %23 = arith.cmpi eq, %21, %22 : vector<8x32xi32>
    %cst_5 = arith.constant 0.000000e+00 : f32
    %24 = vector.broadcast %cst_5 : f32 to vector<8x32xf32>
    %25 = arith.select %23, %11, %24 : vector<8x32xi1>, vector<8x32xf32>
    %cst_6 = arith.constant dense<0.000000e+00> : vector<8xf32>
    %26 = vector.multi_reduction <add>, %25, %cst_6 [1] : vector<8x32xf32> to vector<8xf32>
    %27 = vector.shape_cast %26 : vector<8xf32> to vector<8x1xf32>
    %28 = arith.subf %20, %27 : vector<8x1xf32>
    %c0_i32 = arith.constant 0 : i32
    %29 = vector.broadcast %c0_i32 : i32 to vector<8x1xi32>
    %30 = arith.cmpi ne, %1, %29 : vector<8x1xi32>
    %31 = arith.andi %7, %30 : vector<8x1xi1>
    %c1_i32 = arith.constant 1 : i32
    %32 = vector.broadcast %c1_i32 : i32 to vector<8x1xi32>
    %33 = arith.cmpi ne, %1, %32 : vector<8x1xi32>
    %34 = arith.andi %31, %33 : vector<8x1xi1>
    %c2_i32 = arith.constant 2 : i32
    %35 = vector.broadcast %c2_i32 : i32 to vector<8x1xi32>
    %36 = arith.cmpi ne, %1, %35 : vector<8x1xi32>
    %37 = arith.andi %34, %36 : vector<8x1xi1>
    %c3_i32 = arith.constant 3 : i32
    %38 = vector.broadcast %c3_i32 : i32 to vector<8x1xi32>
    %39 = arith.cmpi ne, %1, %38 : vector<8x1xi32>
    %40 = arith.andi %37, %39 : vector<8x1xi1>
    %41 = arith.extui %40 : vector<8x1xi1> to vector<8x1xi32>
    %42 = arith.sitofp %41 : vector<8x1xi32> to vector<8x1xf32>
    %43 = arith.mulf %28, %42 : vector<8x1xf32>
    %44 = vector.shape_cast %43 : vector<8x1xf32> to vector<1x8x1xf32>
    %cst_7 = arith.constant dense<0.000000e+00> : vector<1xf32>
    %45 = vector.multi_reduction <add>, %44, %cst_7 [1, 2] : vector<1x8x1xf32> to vector<1xf32>
    %46 = vector.shape_cast %45 : vector<1xf32> to vector<1x1x1xf32>
    %47 = vector.extract %46[0, 0, 0] : f32 from vector<1x1x1xf32>
    %48 = vector.shape_cast %42 : vector<8x1xf32> to vector<1x8x1xf32>
    %cst_8 = arith.constant dense<0.000000e+00> : vector<1xf32>
    %49 = vector.multi_reduction <add>, %48, %cst_8 [1, 2] : vector<1x8x1xf32> to vector<1xf32>
    %50 = vector.shape_cast %49 : vector<1xf32> to vector<1x1x1xf32>
    %51 = vector.extract %50[0, 0, 0] : f32 from vector<1x1x1xf32>
    %52 = tpu.iota {dimensions = array<i32: 2>} : vector<1x1x128xi32>
    %c0_i32_9 = arith.constant 0 : i32
    %53 = vector.broadcast %c0_i32_9 : i32 to vector<1x1x128xi32>
    %54 = arith.cmpi eq, %52, %53 : vector<1x1x128xi32>
    %c1_i32_10 = arith.constant 1 : i32
    %55 = vector.broadcast %c1_i32_10 : i32 to vector<1x1x128xi32>
    %56 = arith.cmpi eq, %52, %55 : vector<1x1x128xi32>
    %cst_11 = arith.constant 0.000000e+00 : f32
    %57 = vector.broadcast %51 : f32 to vector<1x1x128xf32>
    %58 = vector.broadcast %cst_11 : f32 to vector<1x1x128xf32>
    %59 = arith.select %56, %57, %58 : vector<1x1x128xi1>, vector<1x1x128xf32>
    %60 = vector.broadcast %47 : f32 to vector<1x1x128xf32>
    %61 = arith.select %54, %60, %59 : vector<1x1x128xi1>, vector<1x1x128xf32>
    %c0_12 = arith.constant 0 : index
    %c0_13 = arith.constant 0 : index
    %c0_14 = arith.constant 0 : index
    %62 = vector.load %arg3[%c0_12, %c0_13, %c0_14] : memref<1x1x128xf32, #tpu.memory_space<vmem>>, vector<1x1x128xf32>
    tpu.vector_store %arg3[%c0_12, %c0_13, %c0_14], %61 {strides = array<i32>} : memref<1x1x128xf32, #tpu.memory_space<vmem>>, vector<1x1x128xf32>,
    return
  }
  func.func @transform_0(%arg0: i32) -> (i32, i32) {
    %c0_i32 = arith.constant 0 : i32
    %c0_i32_0 = arith.constant 0 : i32
    return %arg0, %c0_i32 : i32, i32
  }
  func.func @transform_1(%arg0: i32) -> (i32, i32) {
    %c0_i32 = arith.constant 0 : i32
    %c0_i32_0 = arith.constant 0 : i32
    return %arg0, %c0_i32 : i32, i32
  }
  func.func @transform_2(%arg0: i32) -> (i32, i32, i32) {
    %c0_i32 = arith.constant 0 : i32
    %c0_i32_0 = arith.constant 0 : i32
    %c0_i32_1 = arith.constant 0 : i32
    return %arg0, %c0_i32, %c0_i32_0 : i32, i32, i32
  }
}

</mosaic_0001>

<bundles_post_ra>
// kernel: tpu_custom_call.1
= control target key start
LH: loop header
LB: loop body
LE: loop exit
PB: predicated region body
PF: predicated region fallthrough
CT: control target
= control target key end

     0   :  { %7 = vsyncpa [#allocation3], 0  ;;  %s566_s0 = inlined_call_operand.vmem [shape: f32[14,32], index: 0, kind: input, shape index: {}]   ;;  %s567_s1 = inlined_call_operand.vmem [shape: s32[14,1], index: 1, kind: input, shape index: {}]   ;;  %s568_s2 = inlined_call_operand.hbm [shape: f32[2,1,128], index: 2, kind: output, shape index: {}]  }
   0x1   :  { %9 = vsyncpa [#allocation3 + $0x1], 0  ;;  %s452_s9 = smov 0   ;;  %s454_s10 = smov 0  }
   0x2   :  { %s456_s11 = smov 0   ;;  %s458_s12 = smov 0  }
   0x3 LB: > { %s473_s13 = sadd.s32 4294967295, %s432_s12   ;;  %s309_s14 = sadd.s32 4294967294, %s432_s12   ;;  %s432_s12 = sphi %s458_s12, %s574_s12   ;;  %s428_s11 = sphi %s456_s11, %s573_s11   ;;  %s424_s10 = sphi %s454_s10, %s572_s10   ;;  %s420_s9 = sphi %s452_s9, %s571_s9  }
   0x4   : > { %s477_s15 = sadd.s32 1, %s432_s12   ;;  %s74_s16 = sadd.s32 1, %s428_s11 }
   0x5   : > { %s71_s17 = ssub.s32 %s432_s12, %s477_s15  ;;  %p84_p0 = scmp.ne.s32.totalorder %s428_s11, %s424_s10 }
   0x6   : > { %p72_p1 = scmp.eq.s32.totalorder %s71_s17, 0  ;;  %p85_p2 = scmp.eq.s32.totalorder %s473_s13, 1 }
   0x7   : > { %p90_p3 = scmp.ne.s32.totalorder %s424_s10, %s420_s9  ;;  %p91_p4 = scmp.eq.s32.totalorder %s309_s14, 1 }
   0x8   : > { %s488_s18 = scalar_select %p72_p1, %s428_s11, %s74_s16  }
   0x9   : > { %p490_p5 = por %p85_p2, %p84_p0  ;;  %p494_p6 = por %p91_p4, %p90_p3 }
   0xa   : > { %p312_p7 = scmp.ge.s32.totalorder %s432_s12, 1  ;;  %p123_p8 = scmp.lt.s32.totalorder %s432_s12, 3 }
   0xc   : > { %p124_p9 = pnand %p312_p7, %p123_p8 }
   0xd   : > { %p147_p10 = scmp.lt.s32.totalorder (!%p124_p9), %s473_s13, 1  ;;  %s315_s21 = sshll.u32 (!%p124_p9), %s473_s13, 3  ;;  %v158_v0 = vlaneseq (!%p124_p9)  ;;  %v434_v2 = vmov (!%p124_p9), 0   ;;  %vm166_vm0 = vcmask (!%p124_p9), 261120   ;;  %v435_v23 = vmov (!%p124_p9), 0.0  }
   0xe   : > { %127 = sbr.rel (%p124_p9) target bundleno = 573 (0x23d), region = 28  ;;  %v160_v1 = vstv (!%p124_p9), %s315_s21  ;;  %365 = vset.pattern.permute.xlu0 (!%p124_p9), %v434_v2  ;;  %vm201_vm11 = vcmask (!%p124_p9), 7168   ;;  %s145_s30 = sand.u32 (!%p124_p9), 1, %s424_s10  }
   0xf   : > { %v159_v3 = vshrl.u32 (!%p124_p9), %v158_v0, 7  ;;  %v511_v12 = vand.u32 (!%p124_p9), 127, %v158_v0  ;;  %s317_s3 = sshll.u32 (!%p124_p9), %s473_s13, 4  ;;  %s146_s5 = scalar_lea.vmem (!%p124_p9), [#allocation2], %s145_s30 }
  0x10   : > { %s242_s6 = sshll.u32 (!%p124_p9), %s146_s5, 4  ;;  %s524_s16 = scalar_lea.hbm (!%p124_p9), %s568_s2, %s317_s3  ;;  %s526_s6 = int_to_ptr.vmem [resolvable:$true] %s242_s6 }
  0x11   : > { %v161_v4 = vadd.s32 (!%p124_p9), %v160_v1, %v159_v3  ;;  %vm223_vm12 = vcmp.eq.s32.totalorder (!%p124_p9), %v511_v12, 1  ;;  %vm222_vm13 = vcmp.eq.s32.totalorder (!%p124_p9), %v511_v12, 0  ;;  %s370_s17 = scalar_lea.vmem (!%p124_p9), %s526_s6, 16  ;;  %s436_s21 = smov (!%p124_p9), [#allocation2]  }
  0x12   : > { %p371_p11 = scmp.ne.s32.totalorder (!%p124_p9), %s526_s6, %s370_s17 }
  0x13   : > { %vm162_vm1 = vcmp.lt.s32.totalorder (!%p124_p9), %v161_v4, 14 }
  0x14   : > { %p372_p12 = pnand (!%p124_p9), %p371_p11, %p490_p5 }
  0x15   : > { %s148_s22 = scalar_select %p147_p10, %s473_s13, 1 }
  0x16   : > { %s230_s13 = scalar_lea.sflag [#allocation3], %s145_s30  ;;  %p373_p13 = pneg %p372_p12 }
  0x17   : > { %s313_s23 = sshll.u32 %s148_s22, 3  ;;  %s374_s22 = sshll.u32 %s436_s21, 4  ;;  %s375_s22 = int_to_ptr.vmem [resolvable:$false] %s374_s22 }
  0x18   : > { %s150_s26 = scalar_lea.vmem %s566_s0, %s313_s23  ;;  %s154_s29 = scalar_lea.vmem %s567_s1, %s313_s23 }
  0x19   : > { %v155_v5 = vld [vmem:[%s150_s26] sm:$0xff]  ;;  %s376_s23 = scalar_lea.vmem %s375_s22, 32  ;;  %p377_p0 = scmp.lt.s32.totalorder %s526_s6, %s375_s22 }
  0x1a   : > { %v165_v6 = vsel %vm162_vm1, %v155_v5, 0.0  ;;  %v156_v8 = vld [vmem:[%s154_s29] sm:$0xff]  ;;  %p378_p1 = scmp.lt.s32.totalorder %s376_s23, %s370_s17 }
  0x1b   : > { %v167_v7 = vsel %vm166_vm0, %v165_v6, -inf  ;;  %vm190_vm3 = vcmp.ne.s32.totalorder %v156_v8, 0  ;;  %vm192_vm5 = vcmp.ne.s32.totalorder %v156_v8, 1  ;;  %vm194_vm7 = vcmp.ne.s32.totalorder %v156_v8, 2 }
  0x1c   : > { %168 = vmax.xlane.f32.xlu0 %v167_v7  ;;  %vm191_vm4 = vmand %vm162_vm1, %vm190_vm3  ;;  %vm196_vm9 = vcmp.ne.s32.totalorder %v156_v8, 3  ;;  %p379_p2 = por %p378_p1, %p377_p0 }
  0x1d   : > { %vm193_vm6 = vmand %vm191_vm4, %vm192_vm5 }
  0x1e   : > { %vm195_vm8 = vmand %vm193_vm6, %vm194_vm7  ;;  %p380_p3 = pnand %p379_p2, %p373_p13 }
  0x1f   : > { %vm197_vm10 = vmand %vm195_vm8, %vm196_vm9 }
  0x20   : > { %v316_v24 = vsel %vm197_vm10, 1.0, %v435_v23 }
  0x21   : > { %v212_v28 = vsel %vm201_vm11, %v316_v24, 0.0 }
  0x32   : > { %182 = vperm.xlu0 %365, %v156_v8  }
  0xa9   : > { %v169_v9 = vpop.xlane.xlu0 %168 }
  0xaa   : > { %v170_v10 = vsub.f32 %v165_v6, %v169_v9 }
  0xac   : > { %v171_v11 = vmul.f32 1.442695, %v170_v10 }
  0xae   : > { %366 = vpow2.f32 %v171_v11 }
  0xb1   : > { %v183_v13 = vpop.permute.xlu0 %182 }
  0xb2   : > { %vm184_vm2 = vcmp.eq.s32.totalorder %v511_v12, %v183_v13 }
  0xb3   : > { %v185_v15 = vsel %vm184_vm2, %v165_v6, 0.0 }
  0xb4   : > { %v186_v17 = vsel %vm166_vm0, %v185_v15, 0.0 }
  0xb8   : > { %v367_v14 = vpop.eup %366 }
  0xb9   : > { %v173_v16 = vsel %vm166_vm0, %v367_v14, 0.0 }
  0xba   : > { %174 = vadd.xlane.f32.xlu1 %v173_v16 }
  0xbe   : > { %187 = vadd.xlane.f32.xlu1 %v186_v17 }
 0x147   : > { %v175_v18 = vpop.xlane.xlu1 %174 }
 0x148   : > { %368 = vlog2.f32 %v175_v18 }
 0x14b   : > { %v188_v21 = vpop.xlane.xlu1 %187 }
 0x152   : > { %v369_v19 = vpop.eup %368 }
 0x153   : > { %v177_v20 = vmul.f32 0.6931472, %v369_v19 }
 0x155   : > { %v178_v22 = vadd.f32 %v177_v20, %v169_v9 }
 0x157   : > { %v189_v25 = vsub.f32 %v178_v22, %v188_v21 }
 0x159   : > { %v200_v26 = vmul.f32 %v316_v24, %v189_v25 }
 0x15b   : > { %v202_v27 = vsel %vm201_vm11, %v200_v26, 0.0 }
 0x15c   : > { %203 = vadd.xlane.f32.xlu1 %v202_v27 }
 0x160   : > { %213 = vadd.xlane.f32.xlu1 %v212_v28 }
 0x1e9   : > { %v204_v29 = vpop.xlane.xlu1 %203 }
 0x1ea   : > { %v205_v30 = vrot.slane %v204_v29, 4 }
 0x1ec   : > { %v206_v31 = vadd.f32 %v205_v30, %v204_v29 }
 0x1ed   : > { %v214_v32 = vpop.xlane.xlu1 %213 }
 0x1ee   : > { %v207_v33 = vrot.slane %v206_v31, 2  ;;  %v215_v34 = vrot.slane %v214_v32, 4 }
 0x1f0   : > { %v216_v35 = vadd.f32 %v215_v34, %v214_v32  ;;  %v208_v36 = vadd.f32 %v207_v33, %v206_v31 }
 0x1f2   : > { %v217_v37 = vrot.slane %v216_v35, 2  ;;  %v209_v38 = vrot.slane %v208_v36, 1 }
 0x1f4   : > { %v218_v39 = vadd.f32 %v217_v37, %v216_v35  ;;  %v210_v40 = vadd.f32 %v209_v38, %v208_v36 }
 0x1f6   : > { %320 = vpush %v210_v40  ;;  %v219_v41 = vrot.slane %v218_v39, 1 }
 0x1f8   : > { %v220_v42 = vadd.f32 %v219_v41, %v218_v39 }
 0x1fa   : > { %322 = vpush %v220_v42 }
 0x227   : > { %s321_s4 = spop %320 }
 0x228   : > { %v226_v44 = vstv %s321_s4 }
 0x22b   : > { %s323_s7 = spop %322 }
 0x22c   : > { %v224_v43 = vstv %s323_s7 }
 0x22d   : > { %v225_v45 = vsel %vm223_vm12, %v224_v43, 0.0 }
 0x22e   : > { %v227_v46 = vsel %vm222_vm13, %v226_v44, %v225_v45 }
 0x22f   : > { %228 = vst [vmem:[%s146_s5] sm:$0x1] %v227_v46 }
 0x230   : > { %383 = shalt.err (!%p380_p3)
}
 0x231   : > { %s384_s24 = scalar_lea.hbm %s524_s16, 16  ;;  %s388_s27 = scalar_lea.hbm %s568_s2, 32 }
 0x232   : > { %p385_p4 = scmp.ne.s32.totalorder %s524_s16, %s384_s24  ;;  %p389_p9 = scmp.lt.u32.totalorder %s524_s16, %s568_s2 }
 0x233   : > { %p390_p10 = scmp.lt.u32.totalorder %s388_s27, %s384_s24  ;;  %p392_p12 = scmp.lt.u32.totalorder %s384_s24, %s524_s16 }
 0x234   : > { %p386_p7 = pnand %p385_p4, %p490_p5 }
 0x235   : > { %p391_p11 = por %p390_p10, %p389_p9 }
 0x236   : > { %p387_p8 = pneg %p386_p7 }
 0x237   : > { %p393_p13 = por %p392_p12, %p391_p11 }
 0x239   : > { %p394_p0 = pnand %p393_p13, %p387_p8 }
 0x23b   : > { %397 = shalt.err (!%p394_p0)
}
 0x23c   : > { %324 = dma.vmem_to_hbm [thread:$0]  (%p490_p5), %s526_s6, 16, %s524_s16, %s230_s13  }
 0x23d PF: > { %p330_p1 = scmp.ge.s32.totalorder %s432_s12, 2  ;;  %s254_s30 = sand.u32 1, %s420_s9  }
 0x23e   : > { %s255_s3 = scalar_lea.sflag [#allocation3], %s254_s30 }
 0x23f   : > { %p327_p2 = pnand %p330_p1, %p494_p6 }
 0x241   : > { %415 = dma.done.wait (!%p327_p2), %s255_s3, 16  }
 0x242   : > { %417 = vsyncadd (!%p327_p2), %s255_s3, 4294967280  ;;  %p12_p3 = scmp.ge.s32.totalorder %s477_s15, 4   ;;  %s571_s9 = smov %s424_s10 }
 0x243   : > { %s572_s10 = smov %s428_s11  ;;  %s573_s11 = smov %s488_s18 }
 0x244   : > { %s574_s12 = smov %s477_s15  ;;  %14 = sbr.rel (!%p12_p3) target bundleno = 3 (0x3), region = 66 }
 0x24b   :  { %259 = vsyncpa [#allocation3], 1 }
 0x24c   :  { %261 = vsyncpa [#allocation3 + $0x1], 1 }

</bundles_post_ra>
